<compile_context>
chip_gen: v5e
topology: v5e:2x2
jax: 0.10.0
libtpu: 0.0.40
codegen_flags: <defaults>
</compile_context>

<pallas_src>
import math

import jax
import jax.numpy as jnp
from jax import lax
from jax.experimental import pallas as pl
from jax.experimental.pallas import tpu as pltpu

# Target bytes of the streamed x tile per grid step (the output tile is the
# same size; both are double-buffered).  Multi-MiB tiles amortize the
# ~0.35us/step pipeline overhead and keep the stream near the HBM roofline on
# v5e/v6e/v7x; 2*(8+8) MiB of buffers + params fits physical VMEM on all chips
# once vmem_limit_bytes is raised explicitly.
_TILE_BYTES_TARGET = 8 * 1024 * 1024
# Cap on the lane (last-dim) tile; beyond this the F axis gets its own grid dim.
_MAX_TF = 16384
# Desired minimum number of row-grid steps so v7x's two TensorCores each get
# >= 2 pipelined steps when there is enough work.
_MIN_ROW_STEPS = 4
# Target packed lane width when folding consecutive rows into one row.
_TARGET_LANES = 2048


def _proxynorm1d_kernel(x_ref, p_ref, o_ref):
    """Elementwise hot path: relu(g'*x + b') - m' (inv_std pre-folded)."""
    x = x_ref[...].astype(jnp.float32)      # (tm, tf)
    p = p_ref[...]                          # (3, tf) f32 rows: g', b', m'
    g = p[0:1, :]
    b = p[1:2, :]
    m = p[2:3, :]
    z = jnp.maximum(g * x + b, 0.0)
    o_ref[...] = (z - m).astype(o_ref.dtype)


def _sublane(itemsize: int) -> int:
    """Native packed sublane tile: 8 rows for 4B, 16 for 2B, 32 for 1B dtypes."""
    return max(8, 32 // itemsize)


def _choose_packing(M: int, F: int, target_lanes: int = _TARGET_LANES):
    """Largest k with (k*F) % 128 == 0, M % k == 0 and k*F <= ~target_lanes."""
    base = 128 // math.gcd(F, 128)          # smallest k making k*F lane-aligned
    kmax = max(base, target_lanes // F)
    best = None
    k = base
    while k <= kmax:
        if M % k == 0:
            best = k
        k += base
    return best                             # None -> no lane-dense packing


def _choose_row_tile(Mp: int, tf: int, itemsize: int) -> int:
    """Row tile sized by bytes, sublane-aligned, keeping >= 4 grid steps."""
    sub = _sublane(itemsize)
    tm = _TILE_BYTES_TARGET // (tf * itemsize)
    tm = max(sub, (tm // sub) * sub)
    if Mp >= _MIN_ROW_STEPS * sub:
        # >= 4 row steps => >= 2 pipelined steps per TensorCore on v7x and an
        # even split across the two cores.
        cap = ((Mp // _MIN_ROW_STEPS) // sub) * sub
        tm = min(tm, max(sub, cap))
    if tm >= Mp:
        tm = Mp                             # full-extent block (always legal)
    return tm


def proxy_norm_1d(x, gamma, beta, *, eps: float = 0.03, bias: bool = False):
    """JAX/Pallas equivalent of ProxyNorm1d.forward (act = ReLU)."""
    assert x.ndim in (2, 3), "Input tensor should be 2D or 3D"
    x3 = x[None] if x.ndim == 2 else x
    B, N, F = x3.shape
    M = B * N
    out_dtype = x3.dtype
    itemsize = jnp.dtype(out_dtype).itemsize
    x2 = x3.reshape(M, F)                   # free row-major reshape

    # ---- Proxy statistics: parameter-only work, hoisted out of the kernel ----
    # TODO(synk): for very large F (>= 4K) compute mean/var with a chunked
    # reduction instead of materializing the (F, F) proxy_z intermediate.
    g1 = jnp.asarray(gamma, jnp.float32).reshape(1, F)
    b1 = jnp.asarray(beta, jnp.float32).reshape(1, F)
    proxy_y = jnp.sqrt(2.0) * jax.scipy.special.erfinv(
        2.0 * (jnp.arange(F, dtype=jnp.float32) + eps) / float(F) - 1.0)
    proxy_z = jnp.maximum(g1 * proxy_y[:, None] + b1, 0.0)       # (F, F)
    mean = jnp.mean(proxy_z, axis=0, keepdims=True)              # (1, F)
    denom = float(F) if bias else float(F - 1)                   # torch: unbiased=not bias
    var = jnp.sum((proxy_z - mean) ** 2, axis=0, keepdims=True) / denom
    inv_std = lax.rsqrt(var + eps)                               # (1, F)

    # Fold inv_std into the affine params: relu(y)*s == relu(y*s) for s > 0.
    # TODO(synk): a non-homogeneous activation (act != ReLU) would need the
    # unfused (relu(g*x+b) - mean) * inv_std path instead.
    g_eff = g1 * inv_std
    b_eff = b1 * inv_std
    m_eff = mean * inv_std
    params = jnp.concatenate([g_eff, b_eff, m_eff], axis=0)      # (3, F) f32

    # ---- Lane-dense layout: pack rows (free reshape) or pad F to x128 -------
    k = _choose_packing(M, F)
    if k is not None:
        Fp, Mp = k * F, M // k
        xw = x2.reshape(Mp, Fp)                                   # free reshape
        pw = jnp.tile(params, (1, k)) if k > 1 else params        # (3, Fp)
    else:
        f_pad = (-F) % 128
        Fp, Mp = F + f_pad, M
        xw = jnp.pad(x2, ((0, 0), (0, f_pad)))
        pw = jnp.pad(params, ((0, 0), (0, f_pad)))                # zero pad -> zero out

    # ---- Tiling + explicit VMEM budget ---------------------------------------
    tf = Fp if Fp <= _MAX_TF else _MAX_TF
    tm = _choose_row_tile(Mp, tf, itemsize)
    grid = (pl.cdiv(Mp, tm), pl.cdiv(Fp, tf))

    io_tile_bytes = tm * tf * itemsize                            # x tile == out tile
    params_bytes = 3 * tf * 4
    vmem_bytes = 2 * (2 * io_tile_bytes + params_bytes) + (8 << 20)
    vmem_bytes = int(min(max(vmem_bytes, 16 << 20), 60 << 20))    # < 64 MiB (v7x/TC)

    out_w = pl.pallas_call(
        _proxynorm1d_kernel,
        out_shape=jax.ShapeDtypeStruct((Mp, Fp), out_dtype),
        grid_spec=pltpu.PrefetchScalarGridSpec(
            num_scalar_prefetch=0,
            grid=grid,
            in_specs=[
                pl.BlockSpec((tm, tf), lambda i, j: (i, j)),      # streamed x rows
                pl.BlockSpec((3, tf), lambda i, j: (0, j)),       # folded params
            ],
            out_specs=pl.BlockSpec((tm, tf), lambda i, j: (i, j)),
        ),
        compiler_params=pltpu.CompilerParams(
            dimension_semantics=("parallel", "parallel"),
            vmem_limit_bytes=vmem_bytes,
        ),
    )(xw, pw)

    out2 = out_w.reshape(M, F) if k is not None else out_w[:, :F]
    out3 = out2.reshape(B, N, F)
    # torch `.squeeze(0)`: drop the leading dim only if it has size 1.
    return out3[0] if out3.shape[0] == 1 else out3


def _reference(x, gamma, beta, eps=0.03, bias=False):
    """Pure-JAX reference mirroring the PyTorch forward."""
    x3 = x[None] if x.ndim == 2 else x
    F = x3.shape[-1]
    g = jnp.asarray(gamma, jnp.float32).reshape(1, F)
    b = jnp.asarray(beta, jnp.float32).reshape(1, F)
    z = jnp.maximum(g * x3.astype(jnp.float32) + b, 0.0)
    proxy_y = (jnp.sqrt(2.0) * jax.scipy.special.erfinv(
        2.0 * (jnp.arange(F, dtype=jnp.float32) + eps) / float(F) - 1.0
    )).reshape(F, 1)
    proxy_z = jnp.maximum(g * proxy_y + b, 0.0)
    mean = jnp.mean(proxy_z, axis=0, keepdims=True)
    denom = F if bias else (F - 1)
    var = jnp.sum((proxy_z - mean) ** 2, axis=0, keepdims=True) / denom
    std = lax.rsqrt(var + eps)
    out = ((z - mean) * std).astype(x3.dtype)
    return out[0] if out.shape[0] == 1 else out


if __name__ == "__main__":
    key = jax.random.PRNGKey(0)
    B, N, F = 2, 8, 32
    x = jax.random.normal(key, (B, N, F), dtype=jnp.float32)

    # Parameter init matching the nn.Parameter defaults in __init__:
    # beta = zeros(1, F), gamma = ones(1, F)
    beta = jnp.zeros((1, F), dtype=jnp.float32)
    gamma = jnp.ones((1, F), dtype=jnp.float32)

    out = proxy_norm_1d(x, gamma, beta, eps=0.03, bias=False)
    out = jax.block_until_ready(out)

    ref = _reference(x, gamma, beta, eps=0.03, bias=False)
    assert out.shape == ref.shape, (out.shape, ref.shape)
    assert jnp.allclose(out, ref, atol=1e-5, rtol=1e-5), "mismatch vs reference"

    print("KERNEL_OK")
</pallas_src>

<mosaic_0001>
module attributes {stable_mosaic.version = 11 : i64} {
  func.func @_proxynorm1d_kernel(%arg0: i32, %arg1: i32, %arg2: memref<1x512xf32, #tpu.memory_space<vmem>>, %arg3: memref<3x512xf32, #tpu.memory_space<vmem>>, %arg4: memref<1x512xf32, #tpu.memory_space<vmem>>) attributes {dimension_semantics = [#tpu.dimension_semantics<parallel>, #tpu.dimension_semantics<parallel>], iteration_bounds = array<i64: 1, 1>, scalar_prefetch = 0 : i64, scratch_operands = 0 : i64, tpu.core_type = #tpu.core_type<tc>, window_params = [{transform_indices = @transform_0, window_bounds = array<i64: 1, 512>}, {transform_indices = @transform_1, window_bounds = array<i64: 3, 512>}, {transform_indices = @transform_2, window_bounds = array<i64: 1, 512>}]} {
    %c0 = arith.constant 0 : index
    %c0_0 = arith.constant 0 : index
    %0 = vector.load %arg2[%c0, %c0_0] : memref<1x512xf32, #tpu.memory_space<vmem>>, vector<1x512xf32>
    %c0_1 = arith.constant 0 : index
    %c0_2 = arith.constant 0 : index
    %1 = vector.load %arg3[%c0_1, %c0_2] : memref<3x512xf32, #tpu.memory_space<vmem>>, vector<3x512xf32>
    %2 = vector.extract_strided_slice %1 {offsets = [0, 0], sizes = [1, 512], strides = [1, 1]} : vector<3x512xf32> to vector<1x512xf32>
    %3 = vector.extract_strided_slice %1 {offsets = [1, 0], sizes = [1, 512], strides = [1, 1]} : vector<3x512xf32> to vector<1x512xf32>
    %4 = vector.extract_strided_slice %1 {offsets = [2, 0], sizes = [1, 512], strides = [1, 1]} : vector<3x512xf32> to vector<1x512xf32>
    %5 = arith.mulf %2, %0 : vector<1x512xf32>
    %6 = arith.addf %5, %3 : vector<1x512xf32>
    %cst = arith.constant 0.000000e+00 : f32
    %7 = vector.broadcast %cst : f32 to vector<1x512xf32>
    %8 = arith.maximumf %6, %7 : vector<1x512xf32>
    %9 = arith.subf %8, %4 : vector<1x512xf32>
    %c0_3 = arith.constant 0 : index
    %c0_4 = arith.constant 0 : index
    %10 = vector.load %arg4[%c0_3, %c0_4] : memref<1x512xf32, #tpu.memory_space<vmem>>, vector<1x512xf32>
    tpu.vector_store %arg4[%c0_3, %c0_4], %9 {strides = array<i32>} : memref<1x512xf32, #tpu.memory_space<vmem>>, vector<1x512xf32>,
    return
  }
  func.func @transform_0(%arg0: i32, %arg1: i32) -> (i32, i32) {
    %c0_i32 = arith.constant 0 : i32
    return %arg0, %arg1 : i32, i32
  }
  func.func @transform_1(%arg0: i32, %arg1: i32) -> (i32, i32) {
    %c0_i32 = arith.constant 0 : i32
    %c0_i32_0 = arith.constant 0 : i32
    return %c0_i32, %arg1 : i32, i32
  }
  func.func @transform_2(%arg0: i32, %arg1: i32) -> (i32, i32) {
    %c0_i32 = arith.constant 0 : i32
    return %arg0, %arg1 : i32, i32
  }
}

</mosaic_0001>

<bundles_post_ra>
// kernel: tpu_custom_call.1
= control target key start
LH: loop header
LB: loop body
LE: loop exit
PB: predicated region body
PF: predicated region fallthrough
CT: control target
= control target key end

     0   :  { %7 = vsyncpa [#allocation3], 0  ;;  %s227_s0 = inlined_call_operand.hbm [shape: f32[1,512], index: 0, kind: input, shape index: {}]   ;;  %s228_s1 = inlined_call_operand.hbm [shape: f32[3,512], index: 1, kind: input, shape index: {}]   ;;  %s229_s2 = inlined_call_operand.hbm [shape: f32[1,512], index: 2, kind: output, shape index: {}]  }
   0x1   :  { %8 = vsyncpa [#allocation6], 0 }
   0x2   :  { %9 = vsyncpa [#allocation4], 0  ;;  %s15_s11 = sshll.u32 %s227_s0, 4  ;;  %s198_s12 = smov [#allocation2]   ;;  %s16_s11 = int_to_ptr.hbm [resolvable:$true] %s15_s11 }
   0x3   :  { %s17_s13 = sshll.u32 %s198_s12, 4  ;;  %s26_s16 = sshll.u32 %s228_s1, 4  ;;  %s18_s13 = int_to_ptr.vmem [resolvable:$true] %s17_s13  ;;  %s27_s16 = int_to_ptr.hbm [resolvable:$true] %s26_s16 }
   0x4   :  { %20 = dma.hbm_to_vmem [thread:$0]  %s16_s11, 64, %s18_s13, [#allocation3]  }
   0x5   :  { %s199_s17 = smov [#allocation5]  }
   0x6   :  { %s28_s18 = sshll.u32 %s199_s17, 4  ;;  %s29_s18 = int_to_ptr.vmem [resolvable:$true] %s28_s18 }
   0x7   :  { %31 = dma.hbm_to_vmem [thread:$0]  %s27_s16, 256, %s29_s18, [#allocation6]  }
   0x8   :  { %192 = dma.done.wait [#allocation3], 64  }
   0x9   :  { %193 = vsyncadd [#allocation3], 4294967232 }
   0xa   :  { %194 = dma.done.wait [#allocation6], 256  }
   0xb   :  { %195 = vsyncadd [#allocation6], 4294967040  ;;  %v200_v0 = vmov 286326784   ;;  %v201_v2 = vmov 858989090   ;;  %v88_v21 = vlaneseq  ;;  %vm81_vm0 = vcmask 1040384  }
   0xc   :  { %v45_v1 = vunpack.c.l.s4 %v200_v0  ;;  %v49_v3 = vunpack.c.l.s4 %v201_v2  ;;  %v40_v6 = vld [vmem:[#allocation2] sm:$0xf]  ;;  %v41_v7 = vld [vmem:[#allocation5] sm:$0x77]  ;;  %v42_v8 = vld [vmem:[#allocation5 + $0x8] sm:$0x77] }
   0xd   :  { %v111_v11 = vrot.slane %v41_v7, 9  ;;  %v112_v12 = vrot.slane %v42_v8, 9  ;;  %v113_v17 = vrot.slane %v41_v7, 10  ;;  %v114_v18 = vrot.slane %v42_v8, 10  ;;  %s202_s0 = smov [#allocation7]   ;;  %s100_s21 = sshll.u32 %s229_s2, 4  ;;  %s101_s21 = int_to_ptr.hbm [resolvable:$true] %s100_s21 }
   0xe   :  { %v46_v4 = vunpack.c.0.s8 %v45_v1  ;;  %v50_v5 = vunpack.c.0.s8 %v49_v3  ;;  %vm83_vm1 = vcmask 1042434   ;;  %s98_s1 = sshll.u32 %s202_s0, 4  ;;  %vm85_vm2 = vcmask 1041408   ;;  %s99_s1 = int_to_ptr.vmem [resolvable:$true] %s98_s1 }
   0xf   :  { %vm90_vm3 = vcmp.lt.s32.totalorder %v88_v21, 512 }
  0x10   :  { %v47_v9 = vperm.slane %v40_v6, %v46_v4  ;;  %v51_v10 = vperm.slane %v40_v6, %v50_v5 }
  0x12   :  { %v54_v13 = vmul.f32 %v47_v9, %v41_v7  ;;  %v55_v14 = vmul.f32 %v51_v10, %v42_v8 }
  0x14   :  { %v64_v15 = vadd.f32 %v111_v11, %v54_v13  ;;  %v65_v16 = vadd.f32 %v112_v12, %v55_v14 }
  0x16   :  { %v66_v19 = vmax.f32 %v64_v15, 0.0  ;;  %v67_v20 = vmax.f32 %v65_v16, 0.0 }
  0x18   :  { %v74_v22 = vsub.f32 %v66_v19, %v113_v17  ;;  %v75_v23 = vsub.f32 %v67_v20, %v114_v18 }
  0x1a   :  { %v78_v24 = vrot.slane %v74_v22, 3  ;;  %v79_v25 = vrot.slane %v75_v23, 6  ;;  %v80_v26 = vrot.slane %v75_v23, 1 }
  0x1c   :  { %v82_v27 = vsel %vm81_vm0, %v74_v22, %v78_v24  ;;  %v84_v28 = vsel %vm83_vm1, %v79_v25, %v80_v26 }
  0x1d   :  { %v86_v29 = vsel %vm85_vm2, %v82_v27, %v84_v28 }
  0x1e   :  { %92 = vst.msk [vmem:[#allocation7] sm:$0xf] %vm90_vm3, %v86_v29 }
  0x1f   :  { %103 = dma.vmem_to_hbm [thread:$0]  %s99_s1, 64, %s101_s21, [#allocation4]  }
  0x20   :  { %196 = dma.done.wait [#allocation4], 64  }
  0x21   :  { %197 = vsyncadd [#allocation4], 4294967232 }
  0x22   :  { %108 = vsyncpa [#allocation3], 1 }
  0x23   :  { %109 = vsyncpa [#allocation6], 1 }
  0x24   :  { %110 = vsyncpa [#allocation4], 1 }

</bundles_post_ra>
